<compile_context>
chip_gen: v5e
topology: v5e:2x2
jax: 0.10.0
libtpu: 0.0.40
codegen_flags: <defaults>
</compile_context>

<pallas_src>
import math
import jax
import jax.numpy as jnp
from jax.experimental import pallas as pl
from jax.experimental.pallas import tpu as pltpu


def _make_kernel(scale, b_blk, S, T, D):
    def kernel(src_ref, tlt_ref, mask_ref, wq_ref, bq_ref, wk_ref, bk_ref, out_ref):
        src = src_ref[...]                       # [Bb, S, D]
        tlt = tlt_ref[...]                       # [Bb, T, D]
        mask = mask_ref[...]                     # [Bb, 1, S] int32

        # Projections as single 2-D MXU matmuls over flattened (batch*seq) rows.
        q2 = jnp.dot(tlt.reshape(b_blk * T, D), wq_ref[...],
                     preferred_element_type=jnp.float32) + bq_ref[...]   # [Bb*T, D]
        k2 = jnp.dot(src.reshape(b_blk * S, D), wk_ref[...],
                     preferred_element_type=jnp.float32) + bk_ref[...]   # [Bb*S, D]

        # torch.div(..., rounding_mode='trunc') : truncate toward zero after scaling.
        q = jnp.trunc(q2 / scale).reshape(b_blk, T, D)
        k = k2.reshape(b_blk, S, D)

        # score[b, t, s] = sum_d q[b,t,d] * k[b,s,d]  (contraction on last dims, no .T)
        score = jax.lax.dot_general(
            q, k, dimension_numbers=(((2,), (2,)), ((0,), (0,))),
            preferred_element_type=jnp.float32)                          # [Bb, T, S]

        # mask: src_mask == 0 positions (along S) -> -inf
        score = jnp.where(mask == 0, -jnp.inf, score)                    # [Bb,1,S] bcast over T

        # softmax over S, then NaN -> 0 for fully-masked rows (matches torch path).
        m = jnp.max(score, axis=-1, keepdims=True)
        e = jnp.exp(score - m)
        p = e * pl.reciprocal(jnp.sum(e, axis=-1, keepdims=True), approx=True)
        p = jnp.where(jnp.isnan(p), jnp.zeros_like(p), p)                # [Bb, T, S]

        # TODO(synk): F.dropout(p=0.1) in training mode is skipped (eval semantics).

        # attn_similar[b, s, d] = sum_t p[b,t,s] * tlt[b,t,d]  (no .T)
        attn_sim = jax.lax.dot_general(
            p, tlt, dimension_numbers=(((1,), (1,)), ((0,), (0,))),
            preferred_element_type=jnp.float32)                          # [Bb, S, D]

        # folded residual: 0.5 * (src + attn_sim)
        out_ref[...] = (0.5 * (src + attn_sim)).astype(out_ref.dtype)

    return kernel


def _pick_batch_block(B, S, T, D, dtype_bytes=4,
                      vmem_budget_bytes=8 * 1024 * 1024, min_grid_steps=2):
    """Largest batch block that fits a conservative VMEM budget, keeps >=2 grid
    steps when possible (v7x has 2 TensorCores), and evenly divides B."""
    # double-buffered pipelined blocks per step: src, tlt, out, mask
    per_batch = 2 * dtype_bytes * (2 * S * D + T * D + S)
    # rough f32 in-kernel intermediates (q, k, score, attn_sim)
    per_batch += 4 * (T * D + S * D + T * S + S * D)
    bb = max(1, min(B, vmem_budget_bytes // max(per_batch, 1)))
    while bb > 1 and (B + bb - 1) // bb < min_grid_steps:
        bb -= 1
    while bb > 1 and B % bb != 0:
        bb -= 1
    return bb


def similar_attn_forward(src_embed, tlt_embed, src_mask, wq, bq, wk, bk, d_model,
                         *, b_blk=None):
    B, S, D = src_embed.shape
    _, T, _ = tlt_embed.shape
    scale = math.sqrt(d_model)

    if b_blk is None:
        b_blk = _pick_batch_block(B, S, T, D, src_embed.dtype.itemsize)
    assert B % b_blk == 0, "batch block must evenly divide B"

    mask3 = src_mask.reshape(B, 1, S).astype(jnp.int32)
    bq2 = bq.reshape(1, D)
    bk2 = bk.reshape(1, D)

    kernel = _make_kernel(scale, b_blk, S, T, D)
    vmem_spec = pl.BlockSpec(memory_space=pltpu.MemorySpace.VMEM)  # whole array, single copy

    return pl.pallas_call(
        kernel,
        out_shape=jax.ShapeDtypeStruct((B, S, D), src_embed.dtype),
        grid=(B // b_blk,),
        in_specs=[
            pl.BlockSpec((b_blk, S, D), lambda b: (b, 0, 0)),   # src_embed block
            pl.BlockSpec((b_blk, T, D), lambda b: (b, 0, 0)),   # tlt_embed block
            pl.BlockSpec((b_blk, 1, S), lambda b: (b, 0, 0)),   # src_mask block
            vmem_spec,                                          # W_q ([Din, Dout])
            vmem_spec,                                          # b_q
            vmem_spec,                                          # W_k ([Din, Dout])
            vmem_spec,                                          # b_k
        ],
        out_specs=pl.BlockSpec((b_blk, S, D), lambda b: (b, 0, 0)),
        compiler_params=pltpu.CompilerParams(
            dimension_semantics=("parallel",),
            vmem_limit_bytes=32 * 1024 * 1024,
        ),
    )(src_embed, tlt_embed, mask3, wq, bq2, wk, bk2)


def similar_attn_reference(src_embed, tlt_embed, src_mask, wq, bq, wk, bk, d_model):
    """Pure-JAX reference mirroring the PyTorch forward (eval mode)."""
    scale = math.sqrt(d_model)
    hp = jax.lax.Precision.HIGHEST  # match the kernel's full-f32 MXU path around trunc()
    q = jnp.einsum('btd,de->bte', tlt_embed, wq, precision=hp) + bq     # w_q(tlt)
    k = jnp.einsum('bsd,de->bse', src_embed, wk, precision=hp) + bk     # w_k(src)
    q = jnp.trunc(q / scale)
    score = jnp.einsum('btd,bsd->bts', q, k, precision=hp)              # [B, T, S]
    mask = (src_mask == 0)[:, None, :]                                  # [B, 1, S]
    score = jnp.where(mask, -jnp.inf, score)
    m = jnp.max(score, axis=-1, keepdims=True)
    e = jnp.exp(score - m)
    p = e / jnp.sum(e, axis=-1, keepdims=True)
    p = jnp.where(jnp.isnan(p), 0.0, p)
    attn_sim = jnp.einsum('bts,btd->bsd', p, tlt_embed, precision=hp)
    return 0.5 * src_embed + 0.5 * attn_sim


if __name__ == "__main__":
    # Small but lane-dense config: d_model multiple of 128 so output stores are unmasked.
    B, S, T, D = 2, 16, 8, 128
    key = jax.random.PRNGKey(0)
    k1, k2, k3, k4, k5, k6 = jax.random.split(key, 6)

    src_embed = jax.random.normal(k1, (B, S, D), jnp.float32) * 4.0
    tlt_embed = jax.random.normal(k2, (B, T, D), jnp.float32) * 4.0

    # mask: first batch keeps 12 source positions, second keeps all 16
    src_mask = jnp.stack([
        jnp.concatenate([jnp.ones((12,), jnp.int32), jnp.zeros((S - 12,), jnp.int32)]),
        jnp.ones((S,), jnp.int32),
    ], axis=0)

    # Deterministic parameter init (w_q: xavier-like uniform; biases small uniform)
    limit = math.sqrt(6.0 / (D + D))
    wq = jax.random.uniform(k3, (D, D), jnp.float32, -limit, limit)   # already [Din, Dout]
    wk = jax.random.uniform(k4, (D, D), jnp.float32, -limit, limit)
    bq = jax.random.uniform(k5, (D,), jnp.float32, -0.1, 0.1)
    bk = jax.random.uniform(k6, (D,), jnp.float32, -0.1, 0.1)

    out = similar_attn_forward(src_embed, tlt_embed, src_mask, wq, bq, wk, bk, D)
    out = jax.block_until_ready(out)

    ref = similar_attn_reference(src_embed, tlt_embed, src_mask, wq, bq, wk, bk, D)
    assert out.shape == (B, S, D)
    assert jnp.allclose(out, ref, rtol=1e-2, atol=1e-2), "mismatch vs reference"

    print("KERNEL_OK")
</pallas_src>

<mosaic_0001>
module attributes {stable_mosaic.version = 11 : i64} {
  func.func @kernel(%arg0: i32, %arg1: memref<1x16x128xf32, #tpu.memory_space<vmem>>, %arg2: memref<1x8x128xf32, #tpu.memory_space<vmem>>, %arg3: memref<1x1x16xi32, #tpu.memory_space<vmem>>, %arg4: memref<128x128xf32, #tpu.memory_space<vmem>>, %arg5: memref<1x128xf32, #tpu.memory_space<vmem>>, %arg6: memref<128x128xf32, #tpu.memory_space<vmem>>, %arg7: memref<1x128xf32, #tpu.memory_space<vmem>>, %arg8: memref<1x16x128xf32, #tpu.memory_space<vmem>>) attributes {dimension_semantics = [#tpu.dimension_semantics<parallel>], iteration_bounds = array<i64: 2>, scalar_prefetch = 0 : i64, scratch_operands = 0 : i64, tpu.core_type = #tpu.core_type<tc>, window_params = [{transform_indices = @transform_0, window_bounds = array<i64: 1, 16, 128>}, {transform_indices = @transform_1, window_bounds = array<i64: 1, 8, 128>}, {transform_indices = @transform_2, window_bounds = array<i64: 1, 1, 16>}, {pipeline_mode = #tpu.pipeline_mode<synchronous>, transform_indices = @transform_3, window_bounds = array<i64: 128, 128>}, {pipeline_mode = #tpu.pipeline_mode<synchronous>, transform_indices = @transform_4, window_bounds = array<i64: 1, 128>}, {pipeline_mode = #tpu.pipeline_mode<synchronous>, transform_indices = @transform_5, window_bounds = array<i64: 128, 128>}, {pipeline_mode = #tpu.pipeline_mode<synchronous>, transform_indices = @transform_6, window_bounds = array<i64: 1, 128>}, {transform_indices = @transform_7, window_bounds = array<i64: 1, 16, 128>}]} {
    %c0 = arith.constant 0 : index
    %c0_0 = arith.constant 0 : index
    %c0_1 = arith.constant 0 : index
    %0 = vector.load %arg1[%c0, %c0_0, %c0_1] : memref<1x16x128xf32, #tpu.memory_space<vmem>>, vector<1x16x128xf32>
    %c0_2 = arith.constant 0 : index
    %c0_3 = arith.constant 0 : index
    %c0_4 = arith.constant 0 : index
    %1 = vector.load %arg2[%c0_2, %c0_3, %c0_4] : memref<1x8x128xf32, #tpu.memory_space<vmem>>, vector<1x8x128xf32>
    %c0_5 = arith.constant 0 : index
    %c0_6 = arith.constant 0 : index
    %c0_7 = arith.constant 0 : index
    %2 = vector.load %arg3[%c0_5, %c0_6, %c0_7] : memref<1x1x16xi32, #tpu.memory_space<vmem>>, vector<1x1x16xi32>
    %3 = vector.shape_cast %1 : vector<1x8x128xf32> to vector<8x128xf32>
    %c0_8 = arith.constant 0 : index
    %c0_9 = arith.constant 0 : index
    %4 = vector.load %arg4[%c0_8, %c0_9] : memref<128x128xf32, #tpu.memory_space<vmem>>, vector<128x128xf32>
    %cst = arith.constant dense<0.000000e+00> : vector<8x128xf32>
    %5 = tpu.matmul %3, %4, %cst {dimension_numbers = #tpu.dot_dimension_numbers<[1], [0], [0], [1], [0, 0, 1, 1], [], []>} : vector<8x128xf32>, vector<128x128xf32>, vector<8x128xf32> -> vector<8x128xf32>
    %c0_10 = arith.constant 0 : index
    %c0_11 = arith.constant 0 : index
    %6 = vector.load %arg5[%c0_10, %c0_11] : memref<1x128xf32, #tpu.memory_space<vmem>>, vector<1x128xf32>
    %7 = vector.broadcast %6 : vector<1x128xf32> to vector<8x128xf32>
    %8 = arith.addf %5, %7 : vector<8x128xf32>
    %9 = vector.shape_cast %0 : vector<1x16x128xf32> to vector<16x128xf32>
    %c0_12 = arith.constant 0 : index
    %c0_13 = arith.constant 0 : index
    %10 = vector.load %arg6[%c0_12, %c0_13] : memref<128x128xf32, #tpu.memory_space<vmem>>, vector<128x128xf32>
    %cst_14 = arith.constant dense<0.000000e+00> : vector<16x128xf32>
    %11 = tpu.matmul %9, %10, %cst_14 {dimension_numbers = #tpu.dot_dimension_numbers<[1], [0], [0], [1], [0, 0, 1, 1], [], []>} : vector<16x128xf32>, vector<128x128xf32>, vector<16x128xf32> -> vector<16x128xf32>
    %c0_15 = arith.constant 0 : index
    %c0_16 = arith.constant 0 : index
    %12 = vector.load %arg7[%c0_15, %c0_16] : memref<1x128xf32, #tpu.memory_space<vmem>>, vector<1x128xf32>
    %13 = vector.broadcast %12 : vector<1x128xf32> to vector<16x128xf32>
    %14 = arith.addf %11, %13 : vector<16x128xf32>
    %cst_17 = arith.constant 11.3137083 : f32
    %15 = vector.broadcast %cst_17 : f32 to vector<8x128xf32>
    %16 = arith.divf %8, %15 : vector<8x128xf32>
    %cst_18 = arith.constant 0.000000e+00 : f32
    %17 = vector.broadcast %cst_18 : f32 to vector<8x128xf32>
    %18 = arith.cmpf olt, %16, %17 : vector<8x128xf32>
    %19 = math.ceil %16 : vector<8x128xf32>
    %20 = math.floor %16 : vector<8x128xf32>
    %21 = arith.select %18, %19, %20 : vector<8x128xi1>, vector<8x128xf32>
    %22 = vector.shape_cast %21 : vector<8x128xf32> to vector<1x8x128xf32>
    %23 = vector.shape_cast %14 : vector<16x128xf32> to vector<1x16x128xf32>
    %cst_19 = arith.constant dense<0.000000e+00> : vector<1x8x16xf32>
    %24 = tpu.matmul %22, %23, %cst_19 {dimension_numbers = #tpu.dot_dimension_numbers<[2], [2], [1], [1], [0, 0, 0, 1, 1, 1], [0], [0]>} : vector<1x8x128xf32>, vector<1x16x128xf32>, vector<1x8x16xf32> -> vector<1x8x16xf32>
    %c0_i32 = arith.constant 0 : i32
    %25 = vector.broadcast %c0_i32 : i32 to vector<1x1x16xi32>
    %26 = arith.cmpi eq, %2, %25 : vector<1x1x16xi32>
    %cst_20 = arith.constant 0xFF800000 : f32
    %27 = vector.shape_cast %26 : vector<1x1x16xi1> to vector<1x1x16xi1>
    %28 = vector.broadcast %27 : vector<1x1x16xi1> to vector<1x8x16xi1>
    %29 = vector.broadcast %cst_20 : f32 to vector<1x8x16xf32>
    %30 = arith.select %28, %29, %24 : vector<1x8x16xi1>, vector<1x8x16xf32>
    %cst_21 = arith.constant dense<0xFF800000> : vector<1x8xf32>
    %31 = vector.multi_reduction <maximumf>, %30, %cst_21 [2] : vector<1x8x16xf32> to vector<1x8xf32>
    %32 = vector.shape_cast %31 : vector<1x8xf32> to vector<1x8x1xf32>
    %33 = vector.broadcast %32 : vector<1x8x1xf32> to vector<1x8x16xf32>
    %34 = arith.subf %30, %33 : vector<1x8x16xf32>
    %35 = math.exp %34 : vector<1x8x16xf32>
    %cst_22 = arith.constant dense<0.000000e+00> : vector<1x8xf32>
    %36 = vector.multi_reduction <add>, %35, %cst_22 [2] : vector<1x8x16xf32> to vector<1x8xf32>
    %37 = vector.shape_cast %36 : vector<1x8xf32> to vector<1x8x1xf32>
    %38 = tpu.reciprocal %37 {approx = true} : vector<1x8x1xf32> -> vector<1x8x1xf32>
    %39 = vector.broadcast %38 : vector<1x8x1xf32> to vector<1x8x16xf32>
    %40 = arith.mulf %35, %39 : vector<1x8x16xf32>
    %41 = arith.cmpf one, %40, %40 : vector<1x8x16xf32>
    %cst_23 = arith.constant 0.000000e+00 : f32
    %42 = vector.broadcast %cst_23 : f32 to vector<1x8x16xf32>
    %43 = arith.select %41, %42, %40 : vector<1x8x16xi1>, vector<1x8x16xf32>
    %cst_24 = arith.constant dense<0.000000e+00> : vector<1x16x128xf32>
    %44 = tpu.matmul %43, %1, %cst_24 {dimension_numbers = #tpu.dot_dimension_numbers<[1], [1], [2], [2], [0, 0, 0, 2, 1, 2], [0], [0]>} : vector<1x8x16xf32>, vector<1x8x128xf32>, vector<1x16x128xf32> -> vector<1x16x128xf32>
    %45 = arith.addf %0, %44 : vector<1x16x128xf32>
    %cst_25 = arith.constant 5.000000e-01 : f32
    %46 = vector.broadcast %cst_25 : f32 to vector<1x16x128xf32>
    %47 = arith.mulf %46, %45 : vector<1x16x128xf32>
    %c0_26 = arith.constant 0 : index
    %c0_27 = arith.constant 0 : index
    %c0_28 = arith.constant 0 : index
    %48 = vector.load %arg8[%c0_26, %c0_27, %c0_28] : memref<1x16x128xf32, #tpu.memory_space<vmem>>, vector<1x16x128xf32>
    tpu.vector_store %arg8[%c0_26, %c0_27, %c0_28], %47 {strides = array<i32>} : memref<1x16x128xf32, #tpu.memory_space<vmem>>, vector<1x16x128xf32>,
    return
  }
  func.func @transform_0(%arg0: i32) -> (i32, i32, i32) {
    %c0_i32 = arith.constant 0 : i32
    %c0_i32_0 = arith.constant 0 : i32
    %c0_i32_1 = arith.constant 0 : i32
    return %arg0, %c0_i32, %c0_i32_0 : i32, i32, i32
  }
  func.func @transform_1(%arg0: i32) -> (i32, i32, i32) {
    %c0_i32 = arith.constant 0 : i32
    %c0_i32_0 = arith.constant 0 : i32
    %c0_i32_1 = arith.constant 0 : i32
    return %arg0, %c0_i32, %c0_i32_0 : i32, i32, i32
  }
  func.func @transform_2(%arg0: i32) -> (i32, i32, i32) {
    %c0_i32 = arith.constant 0 : i32
    %c0_i32_0 = arith.constant 0 : i32
    %c0_i32_1 = arith.constant 0 : i32
    return %arg0, %c0_i32, %c0_i32_0 : i32, i32, i32
  }
  func.func @transform_3(%arg0: i32) -> (i32, i32) {
    %c0_i32 = arith.constant 0 : i32
    %c0_i32_0 = arith.constant 0 : i32
    %c0_i32_1 = arith.constant 0 : i32
    return %c0_i32, %c0_i32_0 : i32, i32
  }
  func.func @transform_4(%arg0: i32) -> (i32, i32) {
    %c0_i32 = arith.constant 0 : i32
    %c0_i32_0 = arith.constant 0 : i32
    %c0_i32_1 = arith.constant 0 : i32
    return %c0_i32, %c0_i32_0 : i32, i32
  }
  func.func @transform_5(%arg0: i32) -> (i32, i32) {
    %c0_i32 = arith.constant 0 : i32
    %c0_i32_0 = arith.constant 0 : i32
    %c0_i32_1 = arith.constant 0 : i32
    return %c0_i32, %c0_i32_0 : i32, i32
  }
  func.func @transform_6(%arg0: i32) -> (i32, i32) {
    %c0_i32 = arith.constant 0 : i32
    %c0_i32_0 = arith.constant 0 : i32
    %c0_i32_1 = arith.constant 0 : i32
    return %c0_i32, %c0_i32_0 : i32, i32
  }
  func.func @transform_7(%arg0: i32) -> (i32, i32, i32) {
    %c0_i32 = arith.constant 0 : i32
    %c0_i32_0 = arith.constant 0 : i32
    %c0_i32_1 = arith.constant 0 : i32
    return %arg0, %c0_i32, %c0_i32_0 : i32, i32, i32
  }
}

</mosaic_0001>

<bundles_post_ra>
// kernel: tpu_custom_call.1
= control target key start
LH: loop header
LB: loop body
LE: loop exit
PB: predicated region body
PF: predicated region fallthrough
CT: control target
= control target key end

     0   :  { %s1381_s0 = inlined_call_operand.hbm [shape: f32[2,16,128], index: 0, kind: input, shape index: {}]   ;;  %s1382_s1 = inlined_call_operand.hbm [shape: f32[2,8,128], index: 1, kind: input, shape index: {}]   ;;  %s1383_s2 = inlined_call_operand.hbm [shape: s32[2,1,16], index: 2, kind: input, shape index: {}]   ;;  %s1384_s3 = inlined_call_operand.hbm [shape: f32[128,128], index: 3, kind: input, shape index: {}]   ;;  %s1385_s4 = inlined_call_operand.vmem [shape: f32[1,128], index: 4, kind: input, shape index: {}]   ;;  %s1386_s5 = inlined_call_operand.hbm [shape: f32[128,128], index: 5, kind: input, shape index: {}]   ;;  %s1387_s6 = inlined_call_operand.vmem [shape: f32[1,128], index: 6, kind: input, shape index: {}]   ;;  %s1388_s7 = inlined_call_operand.hbm [shape: f32[2,16,128], index: 7, kind: output, shape index: {}]  }
   0x1   :  { %1399 = sst [smem:[#allocation21_spill]] %s1382_s1 }
   0x2   :  { %1400 = sst [smem:[#allocation22_spill]] %s1384_s3 }
   0x3   :  { %12 = vsyncpa [#allocation3], 0 }
   0x4   :  { %14 = vsyncpa [#allocation3 + $0x1], 0 }
   0x5   :  { %15 = vsyncpa [#allocation6], 0 }
   0x6   :  { %17 = vsyncpa [#allocation6 + $0x1], 0 }
   0x7   :  { %18 = vsyncpa [#allocation9], 0 }
   0x8   :  { %19 = vsyncpa [#allocation4], 0 }
   0x9   :  { %21 = vsyncpa [#allocation4 + $0x1], 0  ;;  %s1147_s24 = smov 0   ;;  %s1149_s25 = smov 0  }
   0xa   :  { %s1151_s26 = smov 0   ;;  %s1153_s27 = smov 0  }
   0xb LB: > { %1401 = sst [smem:[#allocation16_spill]] %s1085_s24  ;;  %s1171_s8 = sadd.s32 4294967295, %s1097_s27   ;;  %s1097_s27 = sphi %s1153_s27, %s1421_s27   ;;  %s1093_s26 = sphi %s1151_s26, %s1426_s26   ;;  %s1089_s25 = sphi %s1149_s25, %s1425_s25   ;;  %s1085_s24 = sphi %s1147_s24, %s1424_s24  }
   0xc   : > { %1402 = sst [smem:[#allocation17_spill]] %s1093_s26  ;;  %p757_p0 = scmp.ge.s32.totalorder %s1097_s27, 1 }
   0xd   : > { %s1403_s3 = sld [smem:[#allocation22_spill]]  ;;  %p1398_p1 = scmp.eq.s32.totalorder %s1171_s8, 0 }
   0xe   : > { %p220_p2 = scmp.lt.s32.totalorder %s1097_s27, 3  ;;  %s1099_s10 = smov [#allocation8]  }
   0xf   : > { %s233_s11 = sshll.u32 %s1099_s10, 4  ;;  %s1389_s13 = smov 128   ;;  %s234_s11 = int_to_ptr.vmem [resolvable:$true] %s233_s11 }
  0x10   : > { %p1176_p3 = pnand %p757_p0, %p220_p2  ;;  %s1391_s14 = smov 8  }
  0x11   : > { %s756_s15 = sadd.s32 4294967294, %s1097_s27   ;;  %s1196_s16 = sadd.s32 1, %s1097_s27  }
  0x12   : > { %p797_p4 = pneg %p1176_p3  ;;  %1406 = sst [smem:[#allocation18_spill]] %s1196_s16 }
  0x13   : > { %s231_s30 = sshll.u32 %s1403_s3, 4  ;;  %s34_s17 = sadd.s32 1, %s1093_s26  ;;  %s232_s30 = int_to_ptr.hbm [resolvable:$true] %s231_s30 }
  0x14   : > { %p1185_p6 = pnand %p797_p4, %p1398_p1  ;;  %s31_s18 = ssub.s32 %s1097_s27, %s1196_s16 }
  0x15   : > { %p41_p7 = scmp.ne.s32.totalorder %s1093_s26, %s1089_s25  ;;  %p32_p8 = scmp.eq.s32.totalorder %s31_s18, 0 }
  0x16   : > { %800 = dma.hbm_to_vmem [thread:$0]  (!%p1185_p6), %s232_s30, 2048, %s234_s11, [#allocation9], %s1389_s13, %s1389_s13, %s1391_s14  }
  0x17   : > { %p42_p9 = scmp.eq.s32.totalorder %s1097_s27, 0  ;;  %p47_p10 = scmp.ne.s32.totalorder %s1089_s25, %s1085_s24 }
  0x18   : > { %p207_p11 = scmp.eq.s32.totalorder %s1171_s8, 1  ;;  %p213_p2 = scmp.eq.s32.totalorder %s756_s15, 1 }
  0x19   : > { %s1208_s19 = scalar_select %p32_p8, %s1093_s26, %s34_s17  }
  0x1a   : > { %p43_p12 = por %p42_p9, %p41_p7  ;;  %p1212_p13 = por %p1398_p1, %p47_p10 }
  0x1b   : > { %1407 = sst [smem:[#allocation19_spill]] %s1208_s19  ;;  %p1216_p0 = por %p207_p11, %p41_p7 }
  0x1c   : > { %p820_p4 = scmp.lt.s32.totalorder %s1097_s27, 2  ;;  %s1222_s22 = sand.u32 1, %s1093_s26  }
  0x1d   : > { %p1224_p5 = por %p213_p2, %p47_p10  ;;  %s289_s28 = sand.u32 1, %s1097_s27  }
  0x1e   : > { %p1229_p8 = pnand %p820_p4, %p43_p12  ;;  %s764_s30 = sshll.u32 %s1222_s22, 3 }
  0x1f   : > { %s1410_s23 = scalar_select %p1224_p5, 1, 0 }
  0x20   : > { %s765_s10 = sshll.u32 %s1097_s27, 3  ;;  %s1413_s1 = sld [smem:[#allocation21_spill]] }
  0x21   : > { %1411 = sst [smem:[#allocation20_spill]] %s1410_s23  ;;  %s293_s18 = scalar_lea.vmem [#allocation5], %s764_s30 }
  0x22   : > { %s301_s13 = sshll.u32 %s293_s18, 4  ;;  %s248_s26 = sshll.u32 %s1386_s5, 4  ;;  %s302_s13 = int_to_ptr.vmem [resolvable:$true] %s301_s13  ;;  %s249_s26 = int_to_ptr.hbm [resolvable:$true] %s248_s26 }
  0x23   : > { %s1241_s16 = scalar_lea.sflag [#allocation6], %s289_s28  ;;  %p907_p9 = pneg %p1229_p8 }
  0x26   : > { %s297_s15 = scalar_lea.hbm %s1413_s1, %s765_s10  ;;  %s910_s11 = scalar_lea.hbm %s1413_s1, 16 }
  0x27   : > { %s299_s14 = sshll.u32 %s297_s15, 4  ;;  %s300_s14 = int_to_ptr.hbm [resolvable:$true] %s299_s14 }
  0x28   : > { %s903_s23 = sshra.s32 %s300_s14, 4  ;;  %s904_s23 = int_to_ptr.hbm [resolvable:$true] %s903_s23 }
  0x29   : > { %s905_s24 = scalar_lea.hbm %s904_s23, 8  ;;  %p911_p12 = scmp.lt.s32.totalorder %s904_s23, %s1413_s1 }
  0x2a   : > { %p906_p7 = scmp.ne.s32.totalorder %s904_s23, %s905_s24  ;;  %p912_p2 = scmp.lt.s32.totalorder %s910_s11, %s905_s24 }
  0x2c   : > { %p908_p10 = pnand %p907_p9, %p906_p7  ;;  %p913_p4 = por %p912_p2, %p911_p12 }
  0x2e   : > { %p909_p11 = pneg %p908_p10 }
  0x30   : > { %p914_p1 = pnand %p913_p4, %p909_p11 }
  0x32   : > { %917 = shalt.err (!%p914_p1)
}
  0x33   : > { %810 = dma.hbm_to_vmem [thread:$0]  (!%p1229_p8), %s300_s14, 128, %s302_s13, %s1241_s16  }
  0x34   : > { %s1102_s3 = smov [#allocation10]   ;;  %s761_s28 = sshll.u32 %s1222_s22, 4 }
  0x35   : > { %s250_s19 = sshll.u32 %s1102_s3, 4  ;;  %s1414_s23 = smov 8   ;;  %s251_s19 = int_to_ptr.vmem [resolvable:$true] %s250_s19 }
  0x36   : > { %s1415_s24 = smov 128   ;;  %s779_s18 = sshll.u32 %s1097_s27, 4 }
  0x37   : > { %803 = dma.hbm_to_vmem [thread:$0]  (!%p1185_p6), %s249_s26, 2048, %s251_s19, [#allocation9], %s1415_s24, %s1415_s24, %s1414_s23  }
  0x38   : > { %s276_s11 = scalar_lea.hbm %s1381_s0, %s779_s18  ;;  %s271_s17 = scalar_lea.vmem [#allocation2], %s761_s28 }
  0x39   : > { %s279_s15 = sshll.u32 %s271_s17, 4  ;;  %s277_s1 = sshll.u32 %s276_s11, 4  ;;  %s280_s15 = int_to_ptr.vmem [resolvable:$true] %s279_s15  ;;  %s278_s1 = int_to_ptr.hbm [resolvable:$true] %s277_s1 }
  0x3a   : > { %s268_s13 = scalar_lea.sflag [#allocation3], %s1222_s22  ;;  %s963_s14 = sshra.s32 %s278_s1, 4  ;;  %s964_s14 = int_to_ptr.hbm [resolvable:$true] %s963_s14 }
  0x3b   : > { %s965_s3 = scalar_lea.hbm %s964_s14, 16  ;;  %s970_s19 = scalar_lea.hbm %s1381_s0, 32 }
  0x3c   : > { %p966_p1 = scmp.ne.s32.totalorder %s964_s14, %s965_s3  ;;  %p971_p6 = scmp.lt.s32.totalorder %s964_s14, %s1381_s0 }
  0x3d   : > { %p972_p11 = scmp.lt.s32.totalorder %s970_s19, %s965_s3 }
  0x3e   : > { %p968_p7 = pnand %p966_p1, %p907_p9 }
  0x3f   : > { %p973_p12 = por %p972_p11, %p971_p6 }
  0x40   : > { %p969_p10 = pneg %p968_p7 }
  0x42   : > { %p974_p2 = pnand %p973_p12, %p969_p10 }
  0x44   : > { %977 = shalt.err (!%p974_p2)
}
  0x45   : > { %807 = dma.hbm_to_vmem [thread:$0]  (!%p1229_p8), %s278_s1, 256, %s280_s15, %s268_s13, %s1415_s24, %s1415_s24, %s1414_s23  }
  0x46   : > { %s314_s11 = scalar_lea.hbm %s1383_s2, %s1097_s27  ;;  %s311_s17 = scalar_lea.vmem [#allocation7], %s1222_s22 }
  0x47   : > { %s318_s26 = sshll.u32 %s311_s17, 4  ;;  %s316_s14 = sshll.u32 %s314_s11, 4  ;;  %s319_s26 = int_to_ptr.vmem [resolvable:$true] %s318_s26  ;;  %s317_s14 = int_to_ptr.hbm [resolvable:$true] %s316_s14 }
  0x48   : > { %s993_s3 = sshra.s32 %s317_s14, 4  ;;  %s1000_s1 = scalar_lea.hbm %s1383_s2, 2  ;;  %s994_s3 = int_to_ptr.hbm [resolvable:$true] %s993_s3 }
  0x49   : > { %s995_s12 = scalar_lea.hbm %s994_s3, 1  ;;  %p1001_p10 = scmp.lt.s32.totalorder %s994_s3, %s1383_s2 }
  0x4a   : > { %p996_p4 = scmp.ne.s32.totalorder %s994_s3, %s995_s12  ;;  %p1002_p6 = scmp.lt.s32.totalorder %s1000_s1, %s995_s12 }
  0x4c   : > { %p998_p1 = pnand %p996_p4, %p907_p9  ;;  %p1003_p11 = por %p1002_p6, %p1001_p10 }
  0x4e   : > { %p999_p7 = pneg %p998_p1 }
  0x50   : > { %p1004_p12 = pnand %p1003_p11, %p999_p7 }
  0x52   : > { %1007 = shalt.err (!%p1004_p12)
}
  0x53   : > { %813 = dma.hbm_to_vmem [thread:$0]  (!%p1229_p8), %s317_s14, 16, %s319_s26, %s1241_s16  }
  0x54   : > { %327 = sbr.rel (%p1176_p3) target bundleno = 973 (0x3cd), region = 48  ;;  %s1302_s22 = sand.u32 (!%p1176_p3), 1, %s1089_s25  }
  0x55   : > { %s767_s15 = sshll.u32 (!%p1176_p3), %s1302_s22, 4  ;;  %s330_s13 = scalar_lea.sflag (!%p1176_p3), [#allocation3], %s1302_s22 }
  0x56   : > { %s1308_s18 = scalar_lea.vmem (!%p1176_p3), [#allocation2], %s767_s15 }
  0x59   : > { %1068 = dma.done.wait (%p1212_p13), %s330_s13, 256  }
  0x5a   : > { %1070 = vsyncadd (%p1212_p13), %s330_s13, 4294967040  ;;  %s339_s9 = sand.u32 1, %s1171_s8   ;;  %s768_s16 = sshll.u32 %s1302_s22, 3 }
  0x5b   : > { %s340_s29 = scalar_lea.sflag [#allocation6], %s339_s9  ;;  %s1316_s28 = scalar_lea.vmem [#allocation5], %s768_s16 }
  0x5c   : > { %1072 = dma.done.wait (%p1212_p13), %s340_s29, 144  }
  0x5d   : > { %1074 = vsyncadd (%p1212_p13), %s340_s29, 4294967152  ;;  %s352_s10 = scalar_lea.vmem [#allocation7], %s1302_s22  ;;  %p1416_p3 = scmp.eq.s32.totalorder %s1171_s8, 0 }
  0x5f   : > { %1076 = dma.done.wait (%p1416_p3), [#allocation9], 4096   ;;  %p1417_p8 = pmov %p1416_p3 }
  0x60   : > { %v462_v0 = vld [vmem:[#allocation10 + $0x78] sm:$0xff]  ;;  %v461_v1 = vld [vmem:[#allocation10 + $0x70] sm:$0xff]  ;;  %v460_v3 = vld [vmem:[#allocation10 + $0x68] sm:$0xff]  ;;  %v1103_v35 = vmov 11.313708   ;;  %v1104_v55 = vmov 0  }
  0x61   : > { %1078 = vsyncadd (%p1417_p8), [#allocation9], 4294963200  ;;  %467 = vmatpush.msra.mxu1 %v462_v0  ;;  %v422_v2 = vld [vmem:[#allocation8 + $0x78] sm:$0xff]  ;;  %v421_v4 = vld [vmem:[#allocation8 + $0x70] sm:$0xff]  ;;  %867 = vrcp.f32 %v1103_v35  ;;  %vm527_vm4 = vcmask 130048   ;;  %vm573_vm6 = vcmask 64512  }
  0x62   : > { %427 = vmatpush.msra.mxu0 %v422_v2  ;;  %v420_v5 = vld [vmem:[#allocation8 + $0x68] sm:$0xff]  ;;  %v459_v6 = vld [vmem:[#allocation10 + $0x60] sm:$0xff]  ;;  %v458_v8 = vld [vmem:[#allocation10 + $0x58] sm:$0xff]  ;;  %s780_s14 = sshll.u32 %s1171_s8, 4  ;;  %s402_s30 = scalar_lea.vmem [#allocation11], %s767_s15 }
  0x63   : > { %468 = vmatpush.msra.mxu1 %v461_v1  ;;  %v419_v7 = vld [vmem:[#allocation8 + $0x60] sm:$0xff]  ;;  %v418_v9 = vld [vmem:[#allocation8 + $0x58] sm:$0xff]  ;;  %v457_v10 = vld [vmem:[#allocation10 + $0x50] sm:$0xff]  ;;  %s621_s19 = scalar_lea.hbm %s1388_s7, %s780_s14  ;;  %s622_s1 = sshll.u32 %s402_s30, 4  ;;  %s623_s1 = int_to_ptr.vmem [resolvable:$true] %s622_s1 }
  0x64   : > { %428 = vmatpush.msra.mxu0 %v421_v4  ;;  %v417_v11 = vld [vmem:[#allocation8 + $0x50] sm:$0xff]  ;;  %v456_v12 = vld [vmem:[#allocation10 + $0x48] sm:$0xff]  ;;  %v455_v15 = vld [vmem:[#allocation10 + $0x40] sm:$0xff]  ;;  %s624_s23 = sshll.u32 %s621_s19, 4  ;;  %s610_s24 = scalar_lea.sflag [#allocation4], %s1302_s22  ;;  %s625_s23 = int_to_ptr.hbm [resolvable:$true] %s624_s23 }
  0x65   : > { %469 = vmatpush.msra.mxu1 %v460_v3  ;;  %v416_v13 = vld [vmem:[#allocation8 + $0x48] sm:$0xff]  ;;  %v415_v16 = vld [vmem:[#allocation8 + $0x40] sm:$0xff]  ;;  %v454_v17 = vld [vmem:[#allocation10 + $0x38] sm:$0xff]  ;;  %s1037_s8 = sshra.s32 %s625_s23, 4  ;;  %s1043_s9 = scalar_lea.hbm %s1388_s7, 32  ;;  %s1038_s8 = int_to_ptr.hbm [resolvable:$true] %s1037_s8 }
  0x66   : > { %429 = vmatpush.msra.mxu0 %v420_v5  ;;  %v405_v14 = vld [vmem:[%s1316_s28] sm:$0xff]  ;;  %v451_v23 = vld [vmem:[#allocation10 + $0x20] sm:$0xff]  ;;  %s1039_s13 = scalar_lea.hbm %s1038_s8, 16  ;;  %p1044_p4 = scmp.lt.s32.totalorder %s1038_s8, %s1388_s7 }
  0x67   : > { %470 = vmatpush.msra.mxu1 %v459_v6  ;;  %595 = vmatpush.msra.mxu3 %v405_v14  ;;  %v414_v18 = vld [vmem:[#allocation8 + $0x38] sm:$0xff]  ;;  %v453_v19 = vld [vmem:[#allocation10 + $0x30] sm:$0xff]  ;;  %v452_v21 = vld [vmem:[#allocation10 + $0x28] sm:$0xff]  ;;  %v868_v36 = vpop.eup %867  ;;  %p1040_p13 = scmp.ne.s32.totalorder %s1038_s8, %s1039_s13  ;;  %p1045_p1 = scmp.lt.s32.totalorder %s1043_s9, %s1039_s13 }
  0x68   : > { %430 = vmatpush.msra.mxu0 %v419_v7  ;;  %v413_v20 = vld [vmem:[#allocation8 + $0x30] sm:$0xff]  ;;  %v412_v22 = vld [vmem:[#allocation8 + $0x28] sm:$0xff]  ;;  %v411_v24 = vld [vmem:[#allocation8 + $0x20] sm:$0xff]  ;;  %v491_v37 = vmul.f32 11.313708, %v868_v36  ;;  %vm495_vm0 = vweird.f32 %v868_v36 }
  0x69   : > { %471 = vmatpush.msra.mxu1 %v458_v8  ;;  %v450_v25 = vld [vmem:[#allocation10 + $0x18] sm:$0xff]  ;;  %v449_v27 = vld [vmem:[#allocation10 + $0x10] sm:$0xff]  ;;  %v448_v29 = vld [vmem:[#allocation10 + $0x8] sm:$0xff]  ;;  %p1041_p9 = pnand %p1040_p13, %p1216_p0  ;;  %p1046_p7 = por %p1045_p1, %p1044_p4 }
  0x6a   : > { %431 = vmatpush.msra.mxu0 %v418_v9  ;;  %v410_v26 = vld [vmem:[#allocation8 + $0x18] sm:$0xff]  ;;  %v409_v28 = vld [vmem:[#allocation8 + $0x10] sm:$0xff]  ;;  %v408_v30 = vld [vmem:[#allocation8 + $0x8] sm:$0xff]  ;;  %v492_v38 = vsub.f32 1.0, %v491_v37 }
  0x6b   : > { %472 = vmatpush.msra.mxu1 %v457_v10  ;;  %v447_v31 = vld [vmem:[#allocation10] sm:$0xff]  ;;  %v866_v40 = vld [vmem:[%s1385_s4] ss:$0 sm:$0xff]  ;;  %p1042_p2 = pneg %p1041_p9 }
  0x6c   : > { %432 = vmatpush.msra.mxu0 %v417_v11  ;;  %v1329_v32 = vld [vmem:[%s1308_s18] sm:$0xff]  ;;  %v1333_v34 = vld [vmem:[%s1308_s18 + $0x8] sm:$0xff]  ;;  %v493_v39 = vmul.f32 %v868_v36, %v492_v38 }
  0x6d   : > { %473 = vmatpush.msra.mxu1 %v456_v12  ;;  %v407_v33 = vld [vmem:[#allocation8] sm:$0xff]  ;;  %v865_v46 = vld [vmem:[%s1387_s6] ss:$0 sm:$0xff]  ;;  %p1047_p10 = pnand %p1046_p7, %p1042_p2 }
  0x6e   : > { %433 = vmatpush.msra.mxu0 %v416_v13  ;;  %v494_v42 = vadd.f32 %v868_v36, %v493_v39  ;;  %v406_v54 = vld [vmem:[%s352_s10] sm:$0x1] }
  0x6f   : > { %474 = vmatpush.msra.mxu1 %v455_v15  ;;  %vm522_vm2 = vcmp.eq.s32.totalorder %v406_v54, 0 }
  0x70   : > { %434 = vmatpush.msra.mxu0 %v415_v16  ;;  %v496_v45 = vsel %vm495_vm0, %v868_v36, %v494_v42  ;;  %v523_v56 = vsel %vm522_vm2, 1, %v1104_v55 }
  0x71   : > { %475 = vmatpush.msra.mxu1 %v454_v17  ;;  %v524_v57 = vperm.slane %v523_v56, 0 }
  0x72   : > { %435 = vmatpush.msra.mxu0 %v414_v18 }
  0x73   : > { %476 = vmatpush.msra.mxu1 %v453_v19  ;;  %vm525_vm3 = vcmp.eq.s32.totalorder %v524_v57, 1 }
  0x74   : > { %436 = vmatpush.msra.mxu0 %v413_v20 }
  0x75   : > { %477 = vmatpush.msra.mxu1 %v452_v21 }
  0x76   : > { %437 = vmatpush.msra.mxu0 %v412_v22 }
  0x77   : > { %478 = vmatpush.msra.mxu1 %v451_v23 }
  0x78   : > { %438 = vmatpush.msra.mxu0 %v411_v24 }
  0x79   : > { %479 = vmatpush.msra.mxu1 %v450_v25 }
  0x7a   : > { %439 = vmatpush.msra.mxu0 %v410_v26 }
  0x7b   : > { %480 = vmatpush.msra.mxu1 %v449_v27 }
  0x7c   : > { %440 = vmatpush.msra.mxu0 %v409_v28 }
  0x7d   : > { %481 = vmatpush.msra.mxu1 %v448_v29 }
  0x7e   : > { %441 = vmatpush.msra.mxu0 %v408_v30 }
  0x7f   : > { %482 = vmatpush.msra.mxu1 %v447_v31 }
  0x80   : > { %483 = vmatmul.f32.vlgmr.msra.gmra.mxu1 %v1329_v32  ;;  %442 = vmatpush.msra.mxu0 %v407_v33 }
  0x81   : > { %443 = vmatmul.f32.vlgmr.msra.gmra.mxu0 %v405_v14 }
  0x88   : > { %486 = vmatmul.f32.gmra.mxu1 %v1333_v34 }
  0xfd   : > { %v484_v41 = vpop.f32.mrf.mxu1 }
  0xfe   : > { %v444_v43 = vpop.f32.mrf.mxu0  ;;  %v485_v52 = vadd.f32 %v865_v46, %v484_v41 }
  0xff   : > { %v445_v44 = vadd.f32 %v866_v40, %v444_v43 }
 0x101   : > { %v497_v47 = vmul.f32 %v496_v45, %v445_v44 }
 0x103   : > { %v499_v50 = vceil.f32 %v497_v47  ;;  %v500_v51 = vfloor.f32 %v497_v47  ;;  %vm498_vm1 = vcmp.lt.f32.partialorder %v497_v47, 0.0 }
 0x105   : > { %v487_v48 = vpop.f32.mrf.mxu1  ;;  %v501_v53 = vsel %vm498_vm1, %v499_v50, %v500_v51 }
 0x106   : > { %v488_v49 = vadd.f32 %v865_v46, %v487_v48 }
 0x108   : > { %516 = vmatpush.xpose.msra.mxu2 %v488_v49 }
 0x10c   : > { %517 = vmatpush.xpose.msra.mxu2 %v485_v52 }
 0x10f   : > { %518 = vmatmul.f32.vlgmr.msra.gmra.mxu2 %v501_v53 }
 0x192   : > { %v519_v58 = vpop.f32.mrf.mxu2 }
 0x193   : > { %v526_v59 = vsel %vm525_vm3, -inf, %v519_v58 }
 0x194   : > { %v528_v60 = vsel %vm527_vm4, %v526_v59, -inf }
 0x195   : > { %529 = vmax.xlane.f32.xlu0 %v528_v60 }
 0x208   : > { %v530_v61 = vpop.xlane.xlu0 %529 }
 0x209   : > { %v531_v62 = vsub.f32 %v526_v59, %v530_v61 }
 0x20b   : > { %v532_v63 = vmul.f32 1.442695, %v531_v62 }
 0x20d   : > { %869 = vpow2.f32 %v532_v63 }
 0x213   : > { %v870_v0 = vpop.eup %869 }
 0x214   : > { %v534_v1 = vsel %vm527_vm4, %v870_v0, 0.0 }
 0x215   : > { %535 = vadd.xlane.f32.xlu0 %v534_v1 }
 0x288   : > { %v536_v2 = vpop.xlane.xlu0 %535 }
 0x289   : > { %871 = vrcp.f32 %v536_v2 }
 0x28f   : > { %v872_v3 = vpop.eup %871 }
 0x290   : > { %v538_v4 = vmul.f32 %v872_v3, %v870_v0 }
 0x292   : > { %vm539_vm5 = vcmp.ne.f32.partialorder %v538_v4, %v538_v4 }
 0x293   : > { %v540_v5 = vsel %vm539_vm5, 0.0, %v538_v4 }
 0x294   : > { %541 = vxpose.xlu1.b32.start.end [1/1] (short) (narrow) %v540_v5, 16 }
 0x338   : > { %v557_v6 = vpop.trf.xlu1 }
 0x339   : > { %772 = vmatmul.msk.f32.vlgmr.msra.gmra.mxu3 %vm573_vm6, %v557_v6 }
 0x340   : > { %v558_v7 = vpop.trf.xlu1 }
 0x341   : > { %773 = vmatmul.msk.f32.gmra.mxu3 %vm573_vm6, %v558_v7 }
 0x3bc   : > { %v597_v8 = vpop.f32.mrf.mxu3 }
 0x3bd   : > { %v603_v9 = vadd.f32 %v597_v8, %v1329_v32 }
 0x3bf   : > { %v605_v10 = vmul.f32 0.5, %v603_v9 }
 0x3c1   : > { %607 = vst [vmem:[%s402_s30] sm:$0xff] %v605_v10 }
 0x3c4   : > { %v600_v11 = vpop.f32.mrf.mxu3 }
 0x3c5   : > { %v604_v12 = vadd.f32 %v600_v11, %v1333_v34 }
 0x3c7   : > { %v606_v13 = vmul.f32 0.5, %v604_v12 }
 0x3c9   : > { %608 = vst [vmem:[%s402_s30 + $0x8] sm:$0xff] %v606_v13 }
 0x3ca   : > { %1050 = shalt.err (!%p1047_p10)
}
 0x3cb   : > { %s1105_s22 = smov 128   ;;  %s1106_s28 = smov 8  }
 0x3cc   : > { %795 = dma.vmem_to_hbm [thread:$0]  (%p1216_p0), %s623_s1, 256, %s625_s23, %s610_s24, %s1105_s22, %s1105_s22, %s1106_s28  }
 0x3cd PF: > { %s1418_s10 = sld [smem:[#allocation16_spill]]  ;;  %p1420_p6 = scmp.ge.s32.totalorder %s1097_s27, 2 }
 0x3cf   : > { %p815_p11 = pnand %p1420_p6, %p1224_p5 }
 0x3d1   : > { %p816_p12 = pneg %p815_p11 }
 0x3d3   : > { %s639_s11 = sand.u32 1, %s1418_s10  }
 0x3d4   : > { %s640_s17 = scalar_lea.sflag [#allocation4], %s639_s11 }
 0x3d5   : > { %1080 = dma.done.wait (%p816_p12), %s640_s17, 256  }
 0x3d6   : > { %1082 = vsyncadd (%p816_p12), %s640_s17, 4294967040  ;;  %s1421_s27 = sld [smem:[#allocation18_spill]]  ;;  %s1424_s24 = smov %s1089_s25 }
 0x3d7   : > { %s1422_s26 = sld [smem:[#allocation17_spill]] }
 0x3d8   : > { %s1423_s14 = sld [smem:[#allocation19_spill]] }
 0x3dc   : > { %p24_p3 = scmp.ge.s32.totalorder %s1421_s27, 4  }
 0x3dd   : > { %s1425_s25 = smov %s1422_s26 }
 0x3de   : > { %s1426_s26 = smov %s1423_s14  ;;  %26 = sbr.rel (!%p24_p3) target bundleno = 11 (0xb), region = 125 }
 0x3e3   :  { %646 = vsyncpa [#allocation3], 1 }
 0x3e4   :  { %648 = vsyncpa [#allocation3 + $0x1], 1 }
 0x3e5   :  { %649 = vsyncpa [#allocation6], 1 }
 0x3e6   :  { %651 = vsyncpa [#allocation6 + $0x1], 1 }
 0x3e7   :  { %652 = vsyncpa [#allocation9], 1 }
 0x3e8   :  { %653 = vsyncpa [#allocation4], 1 }
 0x3e9   :  { %655 = vsyncpa [#allocation4 + $0x1], 1 }

</bundles_post_ra>
